<compile_context>
chip_gen: v5e
topology: v5e:2x2
jax: 0.10.0
libtpu: 0.0.40
codegen_flags: <defaults>
</compile_context>

<pallas_src>
import jax
import jax.numpy as jnp
from jax.experimental import pallas as pl
from jax.experimental.pallas import tpu as pltpu


# ----------------------------------------------------------------------------
# Kernel 1: synthetic-MAE patch embedding + pooled obs token.
#   Each grid step processes F whole frames = M = F*N flattened patch rows:
#     rows (M, K) bf16 @ W (K, D) bf16 -> f32 on the MXU, + bias (f32),
#     obs[f] = mean over that frame's N patch features (f32).
# ----------------------------------------------------------------------------
def _mae_patch_embed_kernel(rows_ref, w_ref, b_ref, patch_ref, obs_ref):
    x = rows_ref[...]                                   # (M, K) bf16
    w = w_ref[...]                                      # (K, D) bf16
    feat = jnp.dot(x, w, preferred_element_type=jnp.float32) + b_ref[...]   # (M, D) f32
    patch_ref[...] = feat.astype(patch_ref.dtype)

    F = obs_ref.shape[0]                                # frames in this block (static)
    M = feat.shape[0]
    N = M // F                                          # patches per frame (static)
    inv_n = 1.0 / N
    for f in range(F):                                  # small static unroll (F <= 16)
        obs_ref[f] = (
            jnp.sum(feat[f * N:(f + 1) * N, :], axis=0, keepdims=True) * inv_n
        ).astype(obs_ref.dtype)


def _frames_per_block(B, N, target_rows=512, max_unroll=16):
    """Frames F per grid step: F divides B, F*N is a multiple of 8 (valid sublane block),
    M = F*N targets ~target_rows MXU rows, and the grid keeps >=2 blocks when possible."""
    cands = [f for f in range(1, B + 1)
             if B % f == 0 and (f * N) % 8 == 0 and f <= max_unroll]
    fits = [f for f in cands if f * N <= target_rows]
    if fits:
        multi = [f for f in fits if f < B]              # prefer >=2 grid blocks
        return max(multi) if multi else max(fits)
    if cands:
        return min(cands)
    return B                                            # single full-array block (always valid)


def mae_forward_pallas(patches, w_embed, b_embed):
    """patches: (B, N, K) -> (obs (B, D) f32, patch (B, N, D) f32)."""
    B, N, K = patches.shape
    D = w_embed.shape[1]
    F = _frames_per_block(B, N)
    M = F * N
    rows = patches.reshape(B * N, K).astype(jnp.bfloat16)
    w_bf = w_embed.astype(jnp.bfloat16)
    b_f32 = b_embed.astype(jnp.float32).reshape(1, D)

    patch_out, obs_out = pl.pallas_call(
        _mae_patch_embed_kernel,
        out_shape=(
            jax.ShapeDtypeStruct((B * N, D), jnp.float32),
            jax.ShapeDtypeStruct((B, 1, D), jnp.float32),
        ),
        grid_spec=pltpu.PrefetchScalarGridSpec(
            num_scalar_prefetch=0,
            grid=(B // F,),
            in_specs=[
                pl.BlockSpec((M, K), lambda i: (i, 0)),
                pl.BlockSpec((K, D), lambda i: (0, 0)),
                pl.BlockSpec((1, D), lambda i: (0, 0)),
            ],
            out_specs=[
                pl.BlockSpec((M, D), lambda i: (i, 0)),
                pl.BlockSpec((F, 1, D), lambda i: (i, 0, 0)),
            ],
        ),
        compiler_params=pltpu.CompilerParams(dimension_semantics=("parallel",)),
    )(rows, w_bf, b_f32)
    return obs_out.reshape(B, D), patch_out.reshape(B, N, D)


# ----------------------------------------------------------------------------
# Kernel 2: normalize_targets — per-pixel normalization over the 3 channels,
# unbiased variance, eps added to sqrt(var) (exactly the PyTorch code), computed
# on three lane-dense channel planes with pure element-wise VPU math.
# ----------------------------------------------------------------------------
def _normalize_targets_kernel(x0_ref, x1_ref, x2_ref, o0_ref, o1_ref, o2_ref):
    x0 = x0_ref[...]
    x1 = x1_ref[...]
    x2 = x2_ref[...]
    mean = (x0 + x1 + x2) * (1.0 / 3.0)
    d0 = x0 - mean
    d1 = x1 - mean
    d2 = x2 - mean
    var = (d0 * d0 + d1 * d1 + d2 * d2) * 0.5            # unbiased: /(n-1), n=3
    inv = 1.0 / (jnp.sqrt(var) + 1e-6)                   # eps on sqrt(var), as in the module
    o0_ref[...] = (d0 * inv).astype(o0_ref.dtype)
    o1_ref[...] = (d1 * inv).astype(o1_ref.dtype)
    o2_ref[...] = (d2 * inv).astype(o2_ref.dtype)


def _pick_block(dim, unit, target):
    """Largest multiple of `unit` that divides `dim` and is <= target; else full dim."""
    if dim <= target:
        return dim
    best = None
    t = unit
    while t <= target:
        if dim % t == 0:
            best = t
        t += unit
    return best if best is not None else dim


def normalize_targets_pallas(x0, x1, x2):
    """Per-pixel channel normalization. x0/x1/x2: (rows, cols) f32 channel planes."""
    M, L = x0.shape
    bm = _pick_block(M, 8, 256)       # sublane tile (multiple of 8 or full)
    bl = _pick_block(L, 128, 1024)    # lane tile (multiple of 128 or full)
    spec = pl.BlockSpec((bm, bl), lambda i, j: (i, j))
    return pl.pallas_call(
        _normalize_targets_kernel,
        out_shape=tuple(jax.ShapeDtypeStruct((M, L), x0.dtype) for _ in range(3)),
        grid_spec=pltpu.PrefetchScalarGridSpec(
            num_scalar_prefetch=0,
            grid=(M // bm, L // bl),
            in_specs=[spec, spec, spec],
            out_specs=[spec, spec, spec],
        ),
        compiler_params=pltpu.CompilerParams(
            dimension_semantics=("parallel", "parallel")),
    )(x0, x1, x2)


# ----------------------------------------------------------------------------
# Glue (plain JAX): patchify, reshapes, wrappers mirroring VisualExtractor.
# ----------------------------------------------------------------------------
def _patchify(imgs, p):
    """imgs: (B, C, H, W) -> (B, hp*wp, p*p*C), MAE patch ordering (hp, wp, p, p, c)."""
    B, C, H, W = imgs.shape
    hp, wp = H // p, W // p
    x = imgs.reshape(B, C, hp, p, wp, p)
    x = jnp.transpose(x, (0, 2, 4, 3, 5, 1))          # (B, hp, wp, p, p, C)
    return x.reshape(B, hp * wp, p * p * C)


def visual_extractor_forward(x, w_embed, b_embed, patch_size):
    """Mirrors VisualExtractor.forward: x (bs, seq, c, h, w) -> (obs, patch)."""
    bs, seq, c, h, w = x.shape
    imgs = x.reshape(bs * seq, c, h, w).astype(jnp.bfloat16)   # x.view(bs*seq, c, h, w)
    patches = _patchify(imgs, patch_size)                      # (B, N, p*p*c) bf16
    obs, patch = mae_forward_pallas(patches, w_embed, b_embed)
    obs = obs.reshape(bs, seq, -1)                             # obs.view(bs, seq, -1)
    return obs, patch


def visual_extractor_targets(x, patch_size, without_norm_pixel_loss=False):
    """Mirrors VisualExtractor.targets (Pallas normalization on lane-dense planes)."""
    bs, seq, c, h, w = x.shape
    assert c == 3, "targets() assumes 3-channel RGB, as in the module"
    p = patch_size
    hp, wp = h // p, w // p
    if without_norm_pixel_loss:
        norm = x.reshape(bs * seq, 3, h * w)
    else:
        planes = x.reshape(bs * seq, 3, h * w)
        n0, n1, n2 = normalize_targets_pallas(
            planes[:, 0, :], planes[:, 1, :], planes[:, 2, :])
        norm = jnp.stack([n0, n1, n2], axis=1)                 # (B, 3, h*w)
    xr = norm.reshape(bs, seq, 3, hp, p, wp, p)
    xp = jnp.transpose(xr, (0, 1, 3, 5, 4, 6, 2))              # (bs, seq, hp, wp, p, p, 3)
    return xp.reshape(bs, seq, hp * wp, p * p * 3)


if __name__ == "__main__":
    # Small, module-consistent shapes.
    bs, seq, c, h, w = 2, 2, 3, 16, 16
    patch_size = 8
    patch_feat_dim = 128                                       # synthetic MAE encoder width
    K = patch_size * patch_size * c                            # 192

    key = jax.random.PRNGKey(0)
    k_x, k_w, k_b = jax.random.split(key, 3)
    x = jax.random.normal(k_x, (bs, seq, c, h, w), dtype=jnp.float32)
    w_embed = 0.02 * jax.random.normal(k_w, (K, patch_feat_dim), dtype=jnp.float32)
    b_embed = 0.02 * jax.random.normal(k_b, (1, patch_feat_dim), dtype=jnp.float32)

    # ---- forward (Pallas) ----
    obs, patch = visual_extractor_forward(x, w_embed, b_embed, patch_size)
    obs = jax.block_until_ready(obs)
    patch = jax.block_until_ready(patch)

    # ---- forward (pure-JAX reference at matching bf16-input precision) ----
    imgs = x.reshape(bs * seq, c, h, w)
    patches_ref = _patchify(imgs, patch_size)
    p_bf = patches_ref.astype(jnp.bfloat16).astype(jnp.float32)
    w_bf = w_embed.astype(jnp.bfloat16).astype(jnp.float32)
    patch_ref = jnp.einsum("bnk,kd->bnd", p_bf, w_bf,
                           precision=jax.lax.Precision.HIGHEST) + b_embed
    obs_ref = jnp.mean(patch_ref, axis=1).reshape(bs, seq, -1)
    assert obs.shape == (bs, seq, patch_feat_dim)
    assert patch.shape == (bs * seq, (h // patch_size) * (w // patch_size), patch_feat_dim)
    assert jnp.allclose(patch, patch_ref, atol=2e-3, rtol=2e-2)
    assert jnp.allclose(obs, obs_ref, atol=2e-3, rtol=2e-2)

    # ---- targets (Pallas) vs reference ----
    tgt = jax.block_until_ready(visual_extractor_targets(x, patch_size))
    hp, wp = h // patch_size, w // patch_size
    xr = x.reshape(bs, seq, 3, hp, patch_size, wp, patch_size)
    xp = jnp.transpose(xr, (0, 1, 3, 5, 4, 6, 2))
    mean = jnp.mean(xp, axis=-1, keepdims=True)
    var = jnp.var(xp, axis=-1, ddof=1, keepdims=True)
    tgt_ref = ((xp - mean) / (jnp.sqrt(var) + 1e-6)).reshape(
        bs, seq, hp * wp, patch_size * patch_size * 3)
    assert tgt.shape == tgt_ref.shape
    assert jnp.allclose(tgt, tgt_ref, atol=1e-4, rtol=1e-3)

    # ---- without_norm_pixel_loss path (pure reshape/permute) ----
    tgt_raw = jax.block_until_ready(
        visual_extractor_targets(x, patch_size, without_norm_pixel_loss=True))
    tgt_raw_ref = xp.reshape(bs, seq, hp * wp, patch_size * patch_size * 3)
    assert jnp.allclose(tgt_raw, tgt_raw_ref)

    print("KERNEL_OK")
</pallas_src>

<mosaic_0001>
module attributes {stable_mosaic.version = 11 : i64} {
  func.func @_mae_patch_embed_kernel(%arg0: i32, %arg1: memref<8x192xbf16, #tpu.memory_space<vmem>>, %arg2: memref<192x128xbf16, #tpu.memory_space<vmem>>, %arg3: memref<1x128xf32, #tpu.memory_space<vmem>>, %arg4: memref<8x128xf32, #tpu.memory_space<vmem>>, %arg5: memref<2x1x128xf32, #tpu.memory_space<vmem>>) attributes {dimension_semantics = [#tpu.dimension_semantics<parallel>], iteration_bounds = array<i64: 2>, scalar_prefetch = 0 : i64, scratch_operands = 0 : i64, tpu.core_type = #tpu.core_type<tc>, window_params = [{transform_indices = @transform_0, window_bounds = array<i64: 8, 192>}, {pipeline_mode = #tpu.pipeline_mode<synchronous>, transform_indices = @transform_1, window_bounds = array<i64: 192, 128>}, {pipeline_mode = #tpu.pipeline_mode<synchronous>, transform_indices = @transform_2, window_bounds = array<i64: 1, 128>}, {transform_indices = @transform_3, window_bounds = array<i64: 8, 128>}, {transform_indices = @transform_4, window_bounds = array<i64: 2, 1, 128>}]} {
    %c0 = arith.constant 0 : index
    %c0_0 = arith.constant 0 : index
    %0 = vector.load %arg1[%c0, %c0_0] : memref<8x192xbf16, #tpu.memory_space<vmem>>, vector<8x192xbf16>
    %c0_1 = arith.constant 0 : index
    %c0_2 = arith.constant 0 : index
    %1 = vector.load %arg2[%c0_1, %c0_2] : memref<192x128xbf16, #tpu.memory_space<vmem>>, vector<192x128xbf16>
    %cst = arith.constant dense<0.000000e+00> : vector<8x128xf32>
    %2 = tpu.matmul %0, %1, %cst {dimension_numbers = #tpu.dot_dimension_numbers<[1], [0], [0], [1], [0, 0, 1, 1], [], []>} : vector<8x192xbf16>, vector<192x128xbf16>, vector<8x128xf32> -> vector<8x128xf32>
    %c0_3 = arith.constant 0 : index
    %c0_4 = arith.constant 0 : index
    %3 = vector.load %arg3[%c0_3, %c0_4] : memref<1x128xf32, #tpu.memory_space<vmem>>, vector<1x128xf32>
    %4 = vector.broadcast %3 : vector<1x128xf32> to vector<8x128xf32>
    %5 = arith.addf %2, %4 : vector<8x128xf32>
    %c0_5 = arith.constant 0 : index
    %c0_6 = arith.constant 0 : index
    %6 = vector.load %arg4[%c0_5, %c0_6] : memref<8x128xf32, #tpu.memory_space<vmem>>, vector<8x128xf32>
    tpu.vector_store %arg4[%c0_5, %c0_6], %5 {strides = array<i32>} : memref<8x128xf32, #tpu.memory_space<vmem>>, vector<8x128xf32>,
    %7 = vector.extract_strided_slice %5 {offsets = [0, 0], sizes = [4, 128], strides = [1, 1]} : vector<8x128xf32> to vector<4x128xf32>
    %cst_7 = arith.constant dense<0.000000e+00> : vector<128xf32>
    %8 = vector.multi_reduction <add>, %7, %cst_7 [0] : vector<4x128xf32> to vector<128xf32>
    %9 = vector.shape_cast %8 : vector<128xf32> to vector<1x128xf32>
    %cst_8 = arith.constant 2.500000e-01 : f32
    %10 = vector.broadcast %cst_8 : f32 to vector<1x128xf32>
    %11 = arith.mulf %9, %10 : vector<1x128xf32>
    %c0_9 = arith.constant 0 : index
    %c0_10 = arith.constant 0 : index
    %c0_11 = arith.constant 0 : index
    %12 = vector.load %arg5[%c0_9, %c0_10, %c0_11] : memref<2x1x128xf32, #tpu.memory_space<vmem>>, vector<1x1x128xf32>
    %13 = vector.shape_cast %12 : vector<1x1x128xf32> to vector<1x128xf32>
    %14 = vector.shape_cast %11 : vector<1x128xf32> to vector<1x1x128xf32>
    tpu.vector_store %arg5[%c0_9, %c0_10, %c0_11], %14 {strides = array<i32>} : memref<2x1x128xf32, #tpu.memory_space<vmem>>, vector<1x1x128xf32>,
    %15 = vector.extract_strided_slice %5 {offsets = [4, 0], sizes = [4, 128], strides = [1, 1]} : vector<8x128xf32> to vector<4x128xf32>
    %cst_12 = arith.constant dense<0.000000e+00> : vector<128xf32>
    %16 = vector.multi_reduction <add>, %15, %cst_12 [0] : vector<4x128xf32> to vector<128xf32>
    %17 = vector.shape_cast %16 : vector<128xf32> to vector<1x128xf32>
    %cst_13 = arith.constant 2.500000e-01 : f32
    %18 = vector.broadcast %cst_13 : f32 to vector<1x128xf32>
    %19 = arith.mulf %17, %18 : vector<1x128xf32>
    %c1 = arith.constant 1 : index
    %c0_14 = arith.constant 0 : index
    %c0_15 = arith.constant 0 : index
    %20 = vector.load %arg5[%c1, %c0_14, %c0_15] : memref<2x1x128xf32, #tpu.memory_space<vmem>>, vector<1x1x128xf32>
    %21 = vector.shape_cast %20 : vector<1x1x128xf32> to vector<1x128xf32>
    %22 = vector.shape_cast %19 : vector<1x128xf32> to vector<1x1x128xf32>
    tpu.vector_store %arg5[%c1, %c0_14, %c0_15], %22 {strides = array<i32>} : memref<2x1x128xf32, #tpu.memory_space<vmem>>, vector<1x1x128xf32>,
    return
  }
  func.func @transform_0(%arg0: i32) -> (i32, i32) {
    %c0_i32 = arith.constant 0 : i32
    %c0_i32_0 = arith.constant 0 : i32
    return %arg0, %c0_i32 : i32, i32
  }
  func.func @transform_1(%arg0: i32) -> (i32, i32) {
    %c0_i32 = arith.constant 0 : i32
    %c0_i32_0 = arith.constant 0 : i32
    %c0_i32_1 = arith.constant 0 : i32
    return %c0_i32, %c0_i32_0 : i32, i32
  }
  func.func @transform_2(%arg0: i32) -> (i32, i32) {
    %c0_i32 = arith.constant 0 : i32
    %c0_i32_0 = arith.constant 0 : i32
    %c0_i32_1 = arith.constant 0 : i32
    return %c0_i32, %c0_i32_0 : i32, i32
  }
  func.func @transform_3(%arg0: i32) -> (i32, i32) {
    %c0_i32 = arith.constant 0 : i32
    %c0_i32_0 = arith.constant 0 : i32
    return %arg0, %c0_i32 : i32, i32
  }
  func.func @transform_4(%arg0: i32) -> (i32, i32, i32) {
    %c0_i32 = arith.constant 0 : i32
    %c0_i32_0 = arith.constant 0 : i32
    %c0_i32_1 = arith.constant 0 : i32
    return %arg0, %c0_i32, %c0_i32_0 : i32, i32, i32
  }
}

</mosaic_0001>

<bundles_post_ra>
// kernel: tpu_custom_call.1
= control target key start
LH: loop header
LB: loop body
LE: loop exit
PB: predicated region body
PF: predicated region fallthrough
CT: control target
= control target key end

     0   :  { %10 = vsyncpa [#allocation3], 0  ;;  %s1060_s0 = inlined_call_operand.hbm [shape: bf16[16,192], index: 0, kind: input, shape index: {}]   ;;  %s1061_s1 = inlined_call_operand.hbm [shape: bf16[192,128], index: 1, kind: input, shape index: {}]   ;;  %s1062_s2 = inlined_call_operand.vmem [shape: f32[1,128], index: 2, kind: input, shape index: {}]   ;;  %s1063_s3 = inlined_call_operand.hbm [shape: f32[16,128], index: 3, kind: output, shape index: {0}]   ;;  %s1064_s4 = inlined_call_operand.hbm [shape: f32[4,1,128], index: 4, kind: output, shape index: {1}]  }
   0x1   :  { %12 = vsyncpa [#allocation3 + $0x1], 0 }
   0x2   :  { %13 = vsyncpa [#allocation6], 0 }
   0x3   :  { %14 = vsyncpa [#allocation4], 0 }
   0x4   :  { %16 = vsyncpa [#allocation4 + $0x1], 0 }
   0x5   :  { %17 = vsyncpa [#allocation9], 0 }
   0x6   :  { %19 = vsyncpa [#allocation9 + $0x1], 0  ;;  %s899_s15 = smov 0   ;;  %s901_s16 = smov 0  }
   0x7   :  { %s903_s17 = smov 0   ;;  %s905_s18 = smov 0  }
   0x8 LB: > { %s161_s21 = sshll.u32 %s1061_s1, 4  ;;  %s923_s22 = sadd.s32 4294967295, %s867_s18   ;;  %s867_s18 = sphi %s905_s18, %s1074_s18   ;;  %s863_s17 = sphi %s903_s17, %s1073_s17   ;;  %s859_s16 = sphi %s901_s16, %s1072_s16   ;;  %s855_s15 = sphi %s899_s15, %s1071_s15   ;;  %s162_s21 = int_to_ptr.hbm [resolvable:$true] %s161_s21 }
   0x9   : > { %p558_p0 = scmp.ge.s32.totalorder %s867_s18, 1  ;;  %p46_p1 = scmp.eq.s32.totalorder %s923_s22, 0 }
   0xa   : > { %p150_p2 = scmp.lt.s32.totalorder %s867_s18, 3  ;;  %s869_s24 = smov [#allocation5]  }
   0xb   : > { %s163_s25 = sshll.u32 %s869_s24, 4  ;;  %s870_s26 = smov 64   ;;  %s164_s25 = int_to_ptr.vmem [resolvable:$true] %s163_s25 }
   0xc   : > { %p928_p3 = pnand %p558_p0, %p150_p2  ;;  %s871_s27 = smov 4  }
   0xd   : > { %s557_s28 = sadd.s32 4294967294, %s867_s18   ;;  %s939_s29 = sadd.s32 1, %s867_s18  }
   0xe   : > { %p648_p4 = pneg %p928_p3  ;;  %s32_s30 = sadd.s32 1, %s863_s17 }
   0xf   : > { %s29_s5 = ssub.s32 %s867_s18, %s939_s29  ;;  %p39_p7 = scmp.ne.s32.totalorder %s863_s17, %s859_s16 }
  0x10   : > { %p649_p6 = pnand %p648_p4, %p46_p1  ;;  %p30_p8 = scmp.eq.s32.totalorder %s29_s5, 0 }
  0x11   : > { %p40_p9 = scmp.eq.s32.totalorder %s867_s18, 0  ;;  %p45_p10 = scmp.ne.s32.totalorder %s859_s16, %s855_s15 }
  0x12   : > { %651 = dma.hbm_to_vmem [thread:$0]  (!%p649_p6), %s162_s21, 1536, %s164_s25, [#allocation6], %s870_s26, %s870_s26, %s871_s27  }
  0x13   : > { %p111_p11 = scmp.eq.s32.totalorder %s923_s22, 1  ;;  %p955_p12 = por %p46_p1, %p45_p10 }
  0x14   : > { %s951_s6 = scalar_select %p30_p8, %s863_s17, %s32_s30  }
  0x15   : > { %p959_p13 = por %p111_p11, %p39_p7  ;;  %p117_p0 = scmp.eq.s32.totalorder %s557_s28, 1 }
  0x16   : > { %p41_p2 = por %p40_p9, %p39_p7  ;;  %s180_s9 = sand.u32 1, %s863_s17  }
  0x17   : > { %p964_p4 = por %p117_p0, %p45_p10  ;;  %p664_p6 = scmp.lt.s32.totalorder %s867_s18, 2 }
  0x18   : > { %s561_s11 = sshll.u32 %s180_s9, 3  ;;  %s625_s12 = sshll.u32 %s867_s18, 3 }
  0x19   : > { %s189_s19 = scalar_lea.hbm %s1060_s0, %s625_s12  ;;  %s184_s21 = scalar_lea.vmem [#allocation2], %s561_s11 }
  0x1a   : > { %s191_s20 = sshll.u32 %s189_s19, 4  ;;  %s193_s24 = sshll.u32 %s184_s21, 4  ;;  %s192_s20 = int_to_ptr.hbm [resolvable:$true] %s191_s20  ;;  %s194_s24 = int_to_ptr.vmem [resolvable:$true] %s193_s24 }
  0x1b   : > { %p973_p8 = pnand %p664_p6, %p41_p2  ;;  %s181_s26 = scalar_lea.sflag [#allocation3], %s180_s9 }
  0x1c   : > { %s735_s27 = sshra.s32 %s192_s20, 4  ;;  %s742_s11 = scalar_lea.hbm %s1060_s0, 16  ;;  %s736_s27 = int_to_ptr.hbm [resolvable:$true] %s735_s27 }
  0x1d   : > { %s737_s28 = scalar_lea.hbm %s736_s27, 8  ;;  %p739_p9 = pneg %p973_p8 }
  0x1e   : > { %p738_p7 = scmp.ne.s32.totalorder %s736_s27, %s737_s28  ;;  %p743_p0 = scmp.lt.s32.totalorder %s736_s27, %s1060_s0 }
  0x1f   : > { %p744_p2 = scmp.lt.s32.totalorder %s742_s11, %s737_s28 }
  0x20   : > { %p740_p10 = pnand %p739_p9, %p738_p7 }
  0x21   : > { %p745_p6 = por %p744_p2, %p743_p0 }
  0x22   : > { %p741_p11 = pneg %p740_p10 }
  0x24   : > { %p746_p5 = pnand %p745_p6, %p741_p11 }
  0x26   : > { %749 = shalt.err (!%p746_p5)
}
  0x27   : > { %655 = dma.hbm_to_vmem [thread:$0]  (!%p973_p8), %s192_s20, 128, %s194_s24, %s181_s26  }
  0x28   : > { %202 = sbr.rel (%p928_p3) target bundleno = 232 (0xe8), region = 32  ;;  %s990_s9 = sand.u32 (!%p928_p3), 1, %s859_s16  }
  0x29   : > { %s565_s14 = sshll.u32 (!%p928_p3), %s990_s9, 3  ;;  %s205_s19 = scalar_lea.sflag (!%p928_p3), [#allocation3], %s990_s9 }
  0x2a   : > { %s208_s21 = scalar_lea.vmem (!%p928_p3), [#allocation2], %s565_s14 }
  0x2d   : > { %838 = dma.done.wait (%p955_p12), %s205_s19, 128  }
  0x2e   : > { %840 = vsyncadd (%p955_p12), %s205_s19, 4294967168 }
  0x2f   : > { %842 = dma.done.wait (%p46_p1), [#allocation6], 1536  }
  0x30   : > { %844 = vsyncadd (%p46_p1), [#allocation6], 4294965760  ;;  %v633_v0 = vld [vmem:[#allocation5 + $0x38] sm:$0xff]  ;;  %v632_v2 = vld [vmem:[#allocation5 + $0x30] sm:$0xff]  ;;  %vm353_vm0 = vcmask 523264   ;;  %s621_s23 = sshll.u32 %s923_s22, 3 }
  0x31   : > { %v637_v1 = vld [vmem:[#allocation5 + $0x58] sm:$0xff]  ;;  %357 = vmatpush.bf16.msra.mxu0 %v633_v0  ;;  %v636_v3 = vld [vmem:[#allocation5 + $0x50] sm:$0xff]  ;;  %v631_v4 = vld [vmem:[#allocation5 + $0x28] sm:$0xff]  ;;  %s423_s26 = scalar_lea.hbm %s1063_s3, %s621_s23  ;;  %s236_s27 = scalar_lea.vmem [#allocation7], %s565_s14  ;;  %vm384_vm1 = vcmask 1043456  }
  0x32   : > { %374 = vmatpush.bf16.msra.mxu1 %v637_v1  ;;  %v635_v5 = vld [vmem:[#allocation5 + $0x48] sm:$0xff]  ;;  %v246_v6 = vld [vmem:[%s208_s21] sm:$0xff]  ;;  %v630_v7 = vld [vmem:[#allocation5 + $0x20] sm:$0xff]  ;;  %s425_s28 = sshll.u32 %s236_s27, 4  ;;  %s427_s30 = sshll.u32 %s423_s26, 4  ;;  %s426_s28 = int_to_ptr.vmem [resolvable:$true] %s425_s28  ;;  %s428_s30 = int_to_ptr.hbm [resolvable:$true] %s427_s30 }
  0x33   : > { %v277_v8 = vunpack.c.h.b16 %v246_v6  ;;  %v634_v9 = vld [vmem:[#allocation5 + $0x40] sm:$0xff]  ;;  %v629_v10 = vld [vmem:[#allocation5 + $0x18] sm:$0xff]  ;;  %v628_v12 = vld [vmem:[#allocation5 + $0x10] sm:$0xff]  ;;  %v276_v14 = vunpack.c.l.b16 %v246_v6  ;;  %s408_s5 = scalar_lea.sflag [#allocation4], %s990_s9  ;;  %s779_s11 = sshra.s32 %s428_s30, 4  ;;  %s780_s11 = int_to_ptr.hbm [resolvable:$true] %s779_s11 }
  0x34   : > { %v627_v13 = vld [vmem:[#allocation5 + $0x8] sm:$0xff]  ;;  %v626_v15 = vld [vmem:[#allocation5] sm:$0xff]  ;;  %v704_v19 = vld [vmem:[%s1062_s2] ss:$0 sm:$0xff]  ;;  %s781_s12 = scalar_lea.hbm %s780_s11, 8  ;;  %s785_s19 = scalar_lea.hbm %s1063_s3, 16 }
  0x35   : > { %358 = vmatpush.bf16.msra.mxu0 %v632_v2  ;;  %v279_v11 = vpack.c.b16 %v277_v8, %v277_v8  ;;  %v278_v16 = vpack.c.b16 %v276_v14, %v276_v14  ;;  %p782_p1 = scmp.ne.s32.totalorder %s780_s11, %s781_s12  ;;  %p786_p12 = scmp.lt.s32.totalorder %s780_s11, %s1063_s3 }
  0x36   : > { %375 = vmatpush.bf16.msra.mxu1 %v636_v3  ;;  %p787_p8 = scmp.lt.s32.totalorder %s785_s19, %s781_s12 }
  0x37   : > { %p783_p3 = pnand %p782_p1, %p959_p13 }
  0x38   : > { %p788_p7 = por %p787_p8, %p786_p12 }
  0x39   : > { %359 = vmatpush.bf16.msra.mxu0 %v631_v4  ;;  %p784_p5 = pneg %p783_p3 }
  0x3a   : > { %376 = vmatpush.bf16.msra.mxu1 %v635_v5 }
  0x3b   : > { %p789_p9 = pnand %p788_p7, %p784_p5 }
  0x3d   : > { %360 = vmatpush.bf16.msra.mxu0 %v630_v7 }
  0x3e   : > { %377 = vmatpush.bf16.msra.mxu1 %v634_v9 }
  0x41   : > { %361 = vmatpush.bf16.msra.mxu0 %v629_v10  ;;  %617 = vmatmul.msk.bf16.vlgmr.msra.gmra.mxu1 %vm353_vm0, %v279_v11 }
  0x45   : > { %362 = vmatpush.bf16.msra.mxu0 %v628_v12 }
  0x49   : > { %363 = vmatpush.bf16.msra.mxu0 %v627_v13 }
  0x4d   : > { %364 = vmatpush.bf16.msra.mxu0 %v626_v15 }
  0x50   : > { %365 = vmatmul.bf16.vlgmr.msra.gmra.mxu0 %v278_v16 }
  0xbe   : > { %v379_v17 = vpop.f32.mrf.mxu1 }
  0xc6   : > { %v381_v18 = vpop.f32.mrf.mxu1 }
  0xcd   : > { %v366_v20 = vpop.f32.mrf.mxu0 }
  0xce   : > { %v367_v21 = vadd.f32 %v704_v19, %v366_v20 }
  0xd0   : > { %v380_v22 = vadd.f32 %v379_v17, %v367_v21 }
  0xd2   : > { %v385_v23 = vsel %vm384_vm1, %v380_v22, 0.0  ;;  %v395_v24 = vrot.slane %v380_v22, 4  ;;  %383 = vst [vmem:[%s236_s27] sm:$0xff] %v380_v22 }
  0xd3   : > { %v386_v25 = vrot.slane %v385_v23, 4 }
  0xd4   : > { %792 = shalt.err (!%p789_p9)
}
  0xd5   : > { %644 = dma.vmem_to_hbm [thread:$0]  (%p959_p13), %s426_s28, 128, %s428_s30, %s408_s5   ;;  %v397_v26 = vsel %vm384_vm1, %v395_v24, 0.0  ;;  %v387_v27 = vadd.f32 %v386_v25, %v385_v23  ;;  %v368_v29 = vpop.f32.mrf.mxu0 }
  0xd6   : > { %v398_v28 = vrot.slane %v397_v26, 4  ;;  %s568_s7 = sshll.u32 %s990_s9, 1  ;;  %s622_s20 = sshll.u32 %s923_s22, 1 }
  0xd7   : > { %v388_v30 = vrot.slane %v387_v27, 2  ;;  %s437_s26 = scalar_lea.hbm %s1064_s4, %s622_s20  ;;  %s243_s27 = scalar_lea.vmem [#allocation8], %s568_s7 }
  0xd8   : > { %v399_v31 = vadd.f32 %v398_v28, %v397_v26  ;;  %s438_s28 = sshll.u32 %s243_s27, 4  ;;  %s440_s30 = sshll.u32 %s437_s26, 4  ;;  %s439_s28 = int_to_ptr.vmem [resolvable:$true] %s438_s28  ;;  %s441_s30 = int_to_ptr.hbm [resolvable:$true] %s440_s30 }
  0xd9   : > { %v389_v32 = vadd.f32 %v388_v30, %v387_v27  ;;  %s413_s22 = scalar_lea.sflag [#allocation9], %s990_s9  ;;  %s807_s5 = sshra.s32 %s441_s30, 4  ;;  %s808_s5 = int_to_ptr.hbm [resolvable:$true] %s807_s5 }
  0xda   : > { %v400_v33 = vrot.slane %v399_v31, 2  ;;  %s809_s11 = scalar_lea.hbm %s808_s5, 2  ;;  %s813_s14 = scalar_lea.hbm %s1064_s4, 4 }
  0xdb   : > { %v390_v34 = vrot.slane %v389_v32, 1  ;;  %p810_p10 = scmp.ne.s32.totalorder %s808_s5, %s809_s11  ;;  %p814_p2 = scmp.lt.s32.totalorder %s808_s5, %s1064_s4 }
  0xdc   : > { %v401_v35 = vadd.f32 %v400_v33, %v399_v31  ;;  %p815_p6 = scmp.lt.s32.totalorder %s813_s14, %s809_s11 }
  0xdd   : > { %v391_v36 = vadd.f32 %v390_v34, %v389_v32  ;;  %p811_p11 = pnand %p810_p10, %p959_p13 }
  0xde   : > { %v402_v37 = vrot.slane %v401_v35, 1  ;;  %p816_p1 = por %p815_p6, %p814_p2 }
  0xdf   : > { %v392_v38 = vmul.f32 0.25, %v391_v36  ;;  %p812_p0 = pneg %p811_p11 }
  0xe0   : > { %v403_v39 = vadd.f32 %v402_v37, %v401_v35 }
  0xe1   : > { %393 = vst [vmem:[%s243_s27] sm:$0x1] %v392_v38  ;;  %p817_p3 = pnand %p816_p1, %p812_p0 }
  0xe2   : > { %v404_v40 = vmul.f32 0.25, %v403_v39 }
  0xe4   : > { %618 = vst [vmem:[%s243_s27 + $0x1] sm:$0x1] %v404_v40 }
  0xe5   : > { %820 = shalt.err (!%p817_p3)
}
  0xe6   : > { %s872_s9 = smov 16   ;;  %s873_s23 = smov 1  }
  0xe7   : > { %645 = dma.vmem_to_hbm [thread:$0]  (%p959_p13), %s439_s28, 32, %s441_s30, %s413_s22, %s872_s9, %s872_s9, %s873_s23  }
  0xe8 PF: > { %s455_s7 = sand.u32 1, %s855_s15   ;;  %p1070_p5 = scmp.ge.s32.totalorder %s867_s18, 2 }
  0xe9   : > { %s456_s20 = scalar_lea.sflag [#allocation4], %s455_s7 }
  0xea   : > { %p657_p12 = pnand %p1070_p5, %p964_p4 }
  0xec   : > { %p658_p8 = pneg %p657_p12 }
  0xee   : > { %846 = dma.done.wait (%p658_p8), %s456_s20, 128  }
  0xef   : > { %848 = vsyncadd (%p658_p8), %s456_s20, 4294967168  ;;  %s466_s24 = scalar_lea.sflag [#allocation9], %s455_s7 }
  0xf0   : > { %850 = dma.done.wait (%p658_p8), %s466_s24, 32  }
  0xf1   : > { %852 = vsyncadd (%p658_p8), %s466_s24, 4294967264  ;;  %p22_p13 = scmp.ge.s32.totalorder %s939_s29, 4   ;;  %s1071_s15 = smov %s859_s16 }
  0xf2   : > { %s1072_s16 = smov %s863_s17  ;;  %s1073_s17 = smov %s951_s6 }
  0xf3   : > { %s1074_s18 = smov %s939_s29  ;;  %24 = sbr.rel (!%p22_p13) target bundleno = 8 (0x8), region = 99 }
  0xf8   :  { %472 = vsyncpa [#allocation3], 1 }
  0xf9   :  { %474 = vsyncpa [#allocation3 + $0x1], 1 }
  0xfa   :  { %475 = vsyncpa [#allocation6], 1 }
  0xfb   :  { %476 = vsyncpa [#allocation4], 1 }
  0xfc   :  { %478 = vsyncpa [#allocation4 + $0x1], 1 }
  0xfd   :  { %479 = vsyncpa [#allocation9], 1 }
  0xfe   :  { %481 = vsyncpa [#allocation9 + $0x1], 1 }

</bundles_post_ra>
